<compile_context>
chip_gen: v7x
topology: tpu7x:2x2x1
jax: 0.10.0
libtpu: 0.0.40
codegen_flags: <defaults>
</compile_context>

<pallas_src>
import jax
import jax.numpy as jnp
from jax.experimental import pallas as pl
from jax.experimental.pallas import tpu as pltpu


_LANE = 512                       # lanes per row: multiple of 128 -> full-width vst
_MAX_BLOCK_BYTES = 2 * 1024 * 1024  # 4 x (double-buffered in + out) = 8 MiB VMEM
_TARGET_GRID_STEPS = 8              # keep pipelining + megacore split alive
_MIN_PALLAS_ELEMENTS = 1 << 18      # below this, fused XLA elementwise wins outright


def _linreg_kernel(w_ref, b_ref, x_ref, o_ref):
    # w_ref, b_ref: (1,) f32 scalars in SMEM; x_ref, o_ref: (tile_rows, _LANE) VMEM tiles.
    y = x_ref[...].astype(jnp.float32) * w_ref[0] + b_ref[0]
    o_ref[...] = y.astype(o_ref.dtype)


def _row_align(itemsize):
    # Sublane packing of the (8, 128) vreg tile: 8 rows at 32-bit, 16 at 16-bit, 32 at 8-bit.
    return 8 * max(1, 4 // itemsize)


def _pick_tile_rows(rows, itemsize):
    align = _row_align(itemsize)
    if rows <= align:
        # Single block covering the whole (small) array: block dim == full array dim.
        return rows
    bytes_per_row = _LANE * itemsize
    max_rows = max(align, _MAX_BLOCK_BYTES // bytes_per_row)
    target = max(1, rows // _TARGET_GRID_STEPS)   # aim for ~8 grid steps
    tile = min(max(target, align), max_rows)
    return (tile // align) * align                # round down to sublane alignment


def _linreg_pallas(x, weight, bias):
    """Lane-dense, tiled, auto-pipelined Pallas path.

    Divisible sizes (n % 512 == 0) run with zero extra HBM passes; otherwise only
    the sub-512-element tail is padded and sliced off afterwards."""
    orig_shape = x.shape
    flat = x.reshape(-1)
    n = flat.shape[0]
    itemsize = jnp.dtype(x.dtype).itemsize

    rem = n % _LANE
    padded = rem != 0
    if padded:
        flat = jnp.pad(flat, (0, _LANE - rem))    # tail-only pad (< 512 elems)
    rows = flat.shape[0] // _LANE
    x2d = flat.reshape(rows, _LANE)               # row-major, layout-preserving

    tile_rows = _pick_tile_rows(rows, itemsize)
    grid = (pl.cdiv(rows, tile_rows),)            # boundary block handles ragged rows

    w32 = weight.astype(jnp.float32)
    b32 = bias.astype(jnp.float32)

    out2d = pl.pallas_call(
        _linreg_kernel,
        out_shape=jax.ShapeDtypeStruct((rows, _LANE), x.dtype),
        grid=grid,
        in_specs=[
            pl.BlockSpec(memory_space=pltpu.SMEM),               # weight (1,)
            pl.BlockSpec(memory_space=pltpu.SMEM),               # bias   (1,)
            pl.BlockSpec((tile_rows, _LANE), lambda i: (i, 0)),   # x tile
        ],
        out_specs=pl.BlockSpec((tile_rows, _LANE), lambda i: (i, 0)),
        compiler_params=pltpu.CompilerParams(
            dimension_semantics=("parallel",),                    # megacore on v7x
        ),
        cost_estimate=pl.CostEstimate(
            flops=2 * n,
            transcendentals=0,
            bytes_accessed=2 * n * itemsize,                      # read x + write y
        ),
    )(w32, b32, x2d)

    out_flat = out2d.reshape(-1)
    if padded:
        out_flat = out_flat[:n]
    return out_flat.reshape(orig_shape)


def linear_regression_forward(x, weight, bias, *, force_pallas=False):
    """y = weight * x + bias (scalar weight/bias broadcast over x)."""
    if x.size < _MIN_PALLAS_ELEMENTS and not force_pallas:
        # XLA fuses this to the HBM roofline already; Pallas only pays off as a
        # fusion site for adjacent ops.
        y = weight.astype(jnp.float32)[0] * x + bias.astype(jnp.float32)[0]
        return y.astype(x.dtype)
    return _linreg_pallas(x, weight, bias)


if __name__ == "__main__":
    key = jax.random.PRNGKey(0)
    k_w, k_b, k_x1, k_x2, k_x3 = jax.random.split(key, 5)

    # Parameters match nn.Parameter(torch.randn(1)): shape (1,) float32.
    weight = jax.random.normal(k_w, (1,), dtype=jnp.float32)
    bias = jax.random.normal(k_b, (1,), dtype=jnp.float32)

    def ref_fn(x):
        return (weight[0] * x + bias[0]).astype(x.dtype)

    # 1) Workflow-style small input (N, 1), N not a multiple of 512: exercises the
    #    tail-pad + slice path (single full-array block).
    x_small = jax.random.normal(k_x1, (50, 1), dtype=jnp.float32)
    y_small = jax.block_until_ready(
        linear_regression_forward(x_small, weight, bias, force_pallas=True))
    assert y_small.shape == x_small.shape and y_small.dtype == x_small.dtype
    assert jnp.allclose(y_small, ref_fn(x_small), atol=1e-6, rtol=1e-6)

    # 2) Divisible size: zero-copy path (no pad, no slice), block == full array.
    x_mid = jax.random.normal(k_x2, (2048, 1), dtype=jnp.float32)
    y_mid = jax.block_until_ready(
        linear_regression_forward(x_mid, weight, bias, force_pallas=True))
    assert y_mid.shape == x_mid.shape and y_mid.dtype == x_mid.dtype
    assert jnp.allclose(y_mid, ref_fn(x_mid), atol=1e-6, rtol=1e-6)

    # 3) Larger divisible size: adaptive tiles -> ~8-step grid with pipelined DMA
    #    (and a megacore split on v7x), still no pad/slice passes.
    x_large = jax.random.normal(k_x3, (131072, 1), dtype=jnp.float32)
    y_large = jax.block_until_ready(
        linear_regression_forward(x_large, weight, bias, force_pallas=True))
    assert y_large.shape == x_large.shape and y_large.dtype == x_large.dtype
    assert jnp.allclose(y_large, ref_fn(x_large), atol=1e-6, rtol=1e-6)

    print("KERNEL_OK")
</pallas_src>

<mosaic_0001>
module attributes {stable_mosaic.version = 11 : i64} {
  func.func @_linreg_kernel(%arg0: i32, %arg1: memref<1xf32, #tpu.memory_space<smem>>, %arg2: memref<1xf32, #tpu.memory_space<smem>>, %arg3: memref<1x512xf32, #tpu.memory_space<vmem>>, %arg4: memref<1x512xf32, #tpu.memory_space<vmem>>) attributes {dimension_semantics = [#tpu.dimension_semantics<parallel>], iteration_bounds = array<i64: 1>, scalar_prefetch = 0 : i64, scratch_operands = 0 : i64, tpu.core_type = #tpu.core_type<tc>, window_params = [{transform_indices = @transform_0, window_bounds = array<i64: 1>}, {transform_indices = @transform_1, window_bounds = array<i64: 1>}, {transform_indices = @transform_2, window_bounds = array<i64: 1, 512>}, {transform_indices = @transform_3, window_bounds = array<i64: 1, 512>}]} {
    %c0 = arith.constant 0 : index
    %c0_0 = arith.constant 0 : index
    %0 = vector.load %arg3[%c0, %c0_0] : memref<1x512xf32, #tpu.memory_space<vmem>>, vector<1x512xf32>
    %c0_1 = arith.constant 0 : index
    %1 = memref.load %arg1[%c0_1] : memref<1xf32, #tpu.memory_space<smem>>
    %2 = vector.broadcast %1 : f32 to vector<1x512xf32>
    %3 = arith.mulf %0, %2 : vector<1x512xf32>
    %c0_2 = arith.constant 0 : index
    %4 = memref.load %arg2[%c0_2] : memref<1xf32, #tpu.memory_space<smem>>
    %5 = vector.broadcast %4 : f32 to vector<1x512xf32>
    %6 = arith.addf %3, %5 : vector<1x512xf32>
    %c0_3 = arith.constant 0 : index
    %c0_4 = arith.constant 0 : index
    %7 = vector.load %arg4[%c0_3, %c0_4] : memref<1x512xf32, #tpu.memory_space<vmem>>, vector<1x512xf32>
    tpu.vector_store %arg4[%c0_3, %c0_4], %6 {strides = array<i32>} : memref<1x512xf32, #tpu.memory_space<vmem>>, vector<1x512xf32>,
    return
  }
  func.func @transform_0(%arg0: i32) -> i32 {
    %c0_i32 = arith.constant 0 : i32
    %c0_i32_0 = arith.constant 0 : i32
    return %c0_i32 : i32
  }
  func.func @transform_1(%arg0: i32) -> i32 {
    %c0_i32 = arith.constant 0 : i32
    %c0_i32_0 = arith.constant 0 : i32
    return %c0_i32 : i32
  }
  func.func @transform_2(%arg0: i32) -> (i32, i32) {
    %c0_i32 = arith.constant 0 : i32
    %c0_i32_0 = arith.constant 0 : i32
    return %arg0, %c0_i32 : i32, i32
  }
  func.func @transform_3(%arg0: i32) -> (i32, i32) {
    %c0_i32 = arith.constant 0 : i32
    %c0_i32_0 = arith.constant 0 : i32
    return %arg0, %c0_i32 : i32, i32
  }
}

</mosaic_0001>

<bundles_post_ra>
// kernel: tpu_custom_call.1
= control target key start
LH: loop header
LB: loop body
LE: loop exit
PB: predicated region body
PF: predicated region fallthrough
CT: control target
= control target key end

     0   :  { %v24_v3 = vlaneseq  ;;  %s110_s0 = inlined_call_operand.<no memory space> [shape: f32[1], index: 0, kind: input, shape index: {}]   ;;  %s111_s1 = inlined_call_operand.<no memory space> [shape: f32[1], index: 1, kind: input, shape index: {}]   ;;  %s112_s2 = inlined_call_operand.vmem [shape: f32[1,512], index: 2, kind: input, shape index: {}]   ;;  %s113_s3 = inlined_call_operand.hbm [shape: f32[1,512], index: 3, kind: output, shape index: {}]  }
   0x1   :  { %v17_v0 = vld [vmem:[%s112_s2] sm:$0xf]  ;;  %v19_v1 = vstv %s110_s0  ;;  %v22_v2 = vstv %s111_s1 }
   0x2   :  { %10 = vsyncpa [#allocation5], 0  ;;  %v20_v4 = vmul.f32 %v19_v1, %v17_v0  ;;  %s68_s18 = smov [#allocation4]   ;;  %vm26_vm0 = vcmp.lt.s32.totalorder %v24_v3, 512 }
   0x3   :  { %s35_s19 = sshll.u32 %s68_s18, 4  ;;  %s36_s19 = int_to_ptr.vmem [resolvable:$true] %s35_s19 }
   0x4   :  { %v23_v5 = vadd.f32 %v22_v2, %v20_v4  ;;  %s44_s20 = scalar_lea.vmem %s36_s19, 64  ;;  %p49_p1 = scmp.lt.s32.totalorder %s36_s19, %s36_s19 }
   0x5   :  { %p45_p0 = scmp.ne.s32.totalorder %s36_s19, %s44_s20  ;;  %p50_p2 = scmp.lt.s32.totalorder %s44_s20, %s44_s20 }
   0x6   :  { %28 = vst.msk [vmem:[#allocation4] sm:$0xf] %vm26_vm0, %v23_v5 }
   0x7   :  { %p51_p3 = por %p50_p2, %p49_p1 }
   0x9   :  { %p52_p4 = pnand %p51_p3, %p45_p0 }
   0xb   :  { %55 = shalt.err (!%p52_p4)
}
   0xc   :  { %s56_s1 = scalar_lea.hbm %s113_s3, 64 }
   0xd   :  { %p57_p5 = scmp.ne.s32.totalorder %s113_s3, %s56_s1  ;;  %p60_p6 = scmp.lt.u32.totalorder %s56_s1, %s113_s3 }
   0xf   :  { %p62_p7 = pnand %p60_p6, %p57_p5 }
  0x11   :  { %65 = shalt.err (!%p62_p7)
}
  0x12   :  { %38 = dma.vmem_to_hbm [thread:$0]  %s36_s19, 64, %s113_s3, [#allocation5]  }
  0x13   :  { %66 = dma.done.wait [#allocation5], 64  }
  0x14   :  { %67 = vsyncadd [#allocation5], 4294967232 }
  0x15   :  { %42 = vsyncpa [#allocation5], 1 }

</bundles_post_ra>
